<compile_context>
chip_gen: v7x
topology: tpu7x:2x2x1
jax: 0.10.0
libtpu: 0.0.40
codegen_flags: <defaults>
</compile_context>

<pallas_src>
import jax
import jax.numpy as jnp
from jax.experimental import pallas as pl
from jax.experimental.pallas import tpu as pltpu


def _rnn_kernel(x_ref,            # (seq, B_pad, I_pad)
                h0_ref,           # (B_pad, H_pad)
                wt_ref, bw_ref,   # W^T: (I_pad, H_pad), bW: (1, H_pad)
                ut_ref, bu_ref,   # U^T: (H_pad, H_pad), bU: (1, H_pad)
                vt_ref, bv_ref,   # V^T: (H_pad, O_pad), bV: (1, O_pad)
                y_ref):           # (B_pad, O_pad)
    seq, batch, in_p = x_ref.shape
    hid_p = ut_ref.shape[0]

    # --- Hoisted, time-independent input projection: one MXU call for all t ---
    x_all = x_ref[...].reshape(seq * batch, in_p)                 # tile-friendly merge
    h2_all = jnp.maximum(
        jnp.dot(x_all, wt_ref[...], preferred_element_type=jnp.float32)
        + bw_ref[...],
        0.0,
    ).reshape(seq, batch, hid_p)

    # Load recurrent weights / bias once (hoisted broadcasts).
    ut = ut_ref[...]
    bu = bu_ref[...]

    # --- Serial recurrence (inherently sequential), statically unrolled ---
    hidden = h0_ref[...]
    for t in range(seq):
        h1 = jnp.maximum(
            jnp.dot(hidden, ut, preferred_element_type=jnp.float32) + bu, 0.0)
        hidden = h1 + h2_all[t]          # static slice: no dynamic gather

    # --- Output projection: only the final step's Y is observable ---
    y_ref[...] = (jnp.dot(hidden, vt_ref[...], preferred_element_type=jnp.float32)
                  + bv_ref[...]).astype(y_ref.dtype)


def _pad_to(x, shape):
    return jnp.pad(x, [(0, s - d) for d, s in zip(x.shape, shape)])


def _round_up(n, m):
    return ((n + m - 1) // m) * m


def network_forward(X, pre_hidden, params):
    """Run the whole recurrent forward in one Pallas kernel invocation."""
    W, bW, U, bU, V, bV = params
    seq, batch, input_size = X.shape
    hidden_size = U.shape[0]
    output_size = V.shape[0]

    # Pad sublane (batch) to 8 and lane dims to 128 for full-vreg, unmasked ops.
    B_pad = _round_up(batch, 8)
    I_pad = _round_up(input_size, 128)
    H_pad = _round_up(hidden_size, 128)
    O_pad = _round_up(output_size, 128)

    Xp  = _pad_to(X, (seq, B_pad, I_pad))
    h0p = _pad_to(pre_hidden, (B_pad, H_pad))
    # Pre-transpose weights to (in, out); zero-pad; biases as 2-D rows.
    Wtp = _pad_to(W.T, (I_pad, H_pad))
    Utp = _pad_to(U.T, (H_pad, H_pad))
    Vtp = _pad_to(V.T, (H_pad, O_pad))
    bWp = _pad_to(bW.reshape(1, hidden_size), (1, H_pad))
    bUp = _pad_to(bU.reshape(1, hidden_size), (1, H_pad))
    bVp = _pad_to(bV.reshape(1, output_size), (1, O_pad))

    vmem = pl.BlockSpec(memory_space=pltpu.MemorySpace.VMEM)

    y_pad = pl.pallas_call(
        _rnn_kernel,
        out_shape=jax.ShapeDtypeStruct((B_pad, O_pad), jnp.float32),
        in_specs=[vmem] * 8,
        out_specs=vmem,
        compiler_params=pltpu.CompilerParams(
            vmem_limit_bytes=16 * 1024 * 1024),
    )(Xp, h0p, Wtp, bWp, Utp, bUp, Vtp, bVp)

    # Slice away padding.
    return y_pad[:batch, :output_size]


def _reference_forward(X, pre_hidden, params):
    """Pure-JAX reference mirroring the PyTorch forward exactly."""
    W, bW, U, bU, V, bV = params
    hidden = pre_hidden
    Y = None
    for i in range(X.shape[0]):
        h1 = jnp.maximum(hidden @ U.T + bU, 0.0)
        h2 = jnp.maximum(X[i] @ W.T + bW, 0.0)
        hidden = h1 + h2
        Y = hidden @ V.T + bV
    return Y


if __name__ == "__main__":
    seq, batch = 8, 2
    input_size, hidden_size, output_size = 16, 32, 8

    key = jax.random.PRNGKey(0)
    ks = jax.random.split(key, 8)
    # Deterministic parameter init (nn.Linear layout: weight (out, in), bias (out,))
    W = jax.random.normal(ks[0], (hidden_size, input_size), jnp.float32) * 0.1
    bW = jax.random.normal(ks[1], (hidden_size,), jnp.float32) * 0.1
    U = jax.random.normal(ks[2], (hidden_size, hidden_size), jnp.float32) * 0.1
    bU = jax.random.normal(ks[3], (hidden_size,), jnp.float32) * 0.1
    V = jax.random.normal(ks[4], (output_size, hidden_size), jnp.float32) * 0.1
    bV = jax.random.normal(ks[5], (output_size,), jnp.float32) * 0.1
    params = (W, bW, U, bU, V, bV)

    X = jax.random.normal(ks[6], (seq, batch, input_size), jnp.float32)
    pre_hidden = jax.random.normal(ks[7], (batch, hidden_size), jnp.float32)

    Y = network_forward(X, pre_hidden, params)
    Y = jax.block_until_ready(Y)

    Y_ref = _reference_forward(X, pre_hidden, params)
    assert Y.shape == (batch, output_size)
    assert jnp.allclose(Y, Y_ref, atol=1e-5, rtol=1e-5), "mismatch vs reference"

    print("KERNEL_OK")
</pallas_src>

<mosaic_0001>
module attributes {stable_mosaic.version = 11 : i64} {
  func.func @_rnn_kernel(%arg0: memref<8x8x128xf32, #tpu.memory_space<vmem>>, %arg1: memref<8x128xf32, #tpu.memory_space<vmem>>, %arg2: memref<128x128xf32, #tpu.memory_space<vmem>>, %arg3: memref<1x128xf32, #tpu.memory_space<vmem>>, %arg4: memref<128x128xf32, #tpu.memory_space<vmem>>, %arg5: memref<1x128xf32, #tpu.memory_space<vmem>>, %arg6: memref<128x128xf32, #tpu.memory_space<vmem>>, %arg7: memref<1x128xf32, #tpu.memory_space<vmem>>, %arg8: memref<8x128xf32, #tpu.memory_space<vmem>>) attributes {dimension_semantics = [], scalar_prefetch = 0 : i64, scratch_operands = 0 : i64, tpu.core_type = #tpu.core_type<tc>} {
    %c0 = arith.constant 0 : index
    %c0_0 = arith.constant 0 : index
    %c0_1 = arith.constant 0 : index
    %0 = vector.load %arg0[%c0, %c0_0, %c0_1] : memref<8x8x128xf32, #tpu.memory_space<vmem>>, vector<8x8x128xf32>
    %1 = vector.shape_cast %0 : vector<8x8x128xf32> to vector<64x128xf32>
    %c0_2 = arith.constant 0 : index
    %c0_3 = arith.constant 0 : index
    %2 = vector.load %arg2[%c0_2, %c0_3] : memref<128x128xf32, #tpu.memory_space<vmem>>, vector<128x128xf32>
    %cst = arith.constant dense<0.000000e+00> : vector<64x128xf32>
    %3 = tpu.matmul %1, %2, %cst {dimension_numbers = #tpu.dot_dimension_numbers<[1], [0], [0], [1], [0, 0, 1, 1], [], []>} : vector<64x128xf32>, vector<128x128xf32>, vector<64x128xf32> -> vector<64x128xf32>
    %c0_4 = arith.constant 0 : index
    %c0_5 = arith.constant 0 : index
    %4 = vector.load %arg3[%c0_4, %c0_5] : memref<1x128xf32, #tpu.memory_space<vmem>>, vector<1x128xf32>
    %5 = vector.broadcast %4 : vector<1x128xf32> to vector<64x128xf32>
    %6 = arith.addf %3, %5 : vector<64x128xf32>
    %cst_6 = arith.constant 0.000000e+00 : f32
    %7 = vector.broadcast %cst_6 : f32 to vector<64x128xf32>
    %8 = arith.maximumf %6, %7 : vector<64x128xf32>
    %9 = vector.shape_cast %8 : vector<64x128xf32> to vector<8x8x128xf32>
    %c0_7 = arith.constant 0 : index
    %c0_8 = arith.constant 0 : index
    %10 = vector.load %arg4[%c0_7, %c0_8] : memref<128x128xf32, #tpu.memory_space<vmem>>, vector<128x128xf32>
    %c0_9 = arith.constant 0 : index
    %c0_10 = arith.constant 0 : index
    %11 = vector.load %arg5[%c0_9, %c0_10] : memref<1x128xf32, #tpu.memory_space<vmem>>, vector<1x128xf32>
    %c0_11 = arith.constant 0 : index
    %c0_12 = arith.constant 0 : index
    %12 = vector.load %arg1[%c0_11, %c0_12] : memref<8x128xf32, #tpu.memory_space<vmem>>, vector<8x128xf32>
    %cst_13 = arith.constant dense<0.000000e+00> : vector<8x128xf32>
    %13 = tpu.matmul %12, %10, %cst_13 {dimension_numbers = #tpu.dot_dimension_numbers<[1], [0], [0], [1], [0, 0, 1, 1], [], []>} : vector<8x128xf32>, vector<128x128xf32>, vector<8x128xf32> -> vector<8x128xf32>
    %14 = vector.broadcast %11 : vector<1x128xf32> to vector<8x128xf32>
    %15 = arith.addf %13, %14 : vector<8x128xf32>
    %cst_14 = arith.constant 0.000000e+00 : f32
    %16 = vector.broadcast %cst_14 : f32 to vector<8x128xf32>
    %17 = arith.maximumf %15, %16 : vector<8x128xf32>
    %18 = vector.extract_strided_slice %9 {offsets = [0, 0, 0], sizes = [1, 8, 128], strides = [1, 1, 1]} : vector<8x8x128xf32> to vector<1x8x128xf32>
    %19 = vector.shape_cast %18 : vector<1x8x128xf32> to vector<8x128xf32>
    %20 = arith.addf %17, %19 : vector<8x128xf32>
    %cst_15 = arith.constant dense<0.000000e+00> : vector<8x128xf32>
    %21 = tpu.matmul %20, %10, %cst_15 {dimension_numbers = #tpu.dot_dimension_numbers<[1], [0], [0], [1], [0, 0, 1, 1], [], []>} : vector<8x128xf32>, vector<128x128xf32>, vector<8x128xf32> -> vector<8x128xf32>
    %22 = vector.broadcast %11 : vector<1x128xf32> to vector<8x128xf32>
    %23 = arith.addf %21, %22 : vector<8x128xf32>
    %cst_16 = arith.constant 0.000000e+00 : f32
    %24 = vector.broadcast %cst_16 : f32 to vector<8x128xf32>
    %25 = arith.maximumf %23, %24 : vector<8x128xf32>
    %26 = vector.extract_strided_slice %9 {offsets = [1, 0, 0], sizes = [1, 8, 128], strides = [1, 1, 1]} : vector<8x8x128xf32> to vector<1x8x128xf32>
    %27 = vector.shape_cast %26 : vector<1x8x128xf32> to vector<8x128xf32>
    %28 = arith.addf %25, %27 : vector<8x128xf32>
    %cst_17 = arith.constant dense<0.000000e+00> : vector<8x128xf32>
    %29 = tpu.matmul %28, %10, %cst_17 {dimension_numbers = #tpu.dot_dimension_numbers<[1], [0], [0], [1], [0, 0, 1, 1], [], []>} : vector<8x128xf32>, vector<128x128xf32>, vector<8x128xf32> -> vector<8x128xf32>
    %30 = vector.broadcast %11 : vector<1x128xf32> to vector<8x128xf32>
    %31 = arith.addf %29, %30 : vector<8x128xf32>
    %cst_18 = arith.constant 0.000000e+00 : f32
    %32 = vector.broadcast %cst_18 : f32 to vector<8x128xf32>
    %33 = arith.maximumf %31, %32 : vector<8x128xf32>
    %34 = vector.extract_strided_slice %9 {offsets = [2, 0, 0], sizes = [1, 8, 128], strides = [1, 1, 1]} : vector<8x8x128xf32> to vector<1x8x128xf32>
    %35 = vector.shape_cast %34 : vector<1x8x128xf32> to vector<8x128xf32>
    %36 = arith.addf %33, %35 : vector<8x128xf32>
    %cst_19 = arith.constant dense<0.000000e+00> : vector<8x128xf32>
    %37 = tpu.matmul %36, %10, %cst_19 {dimension_numbers = #tpu.dot_dimension_numbers<[1], [0], [0], [1], [0, 0, 1, 1], [], []>} : vector<8x128xf32>, vector<128x128xf32>, vector<8x128xf32> -> vector<8x128xf32>
    %38 = vector.broadcast %11 : vector<1x128xf32> to vector<8x128xf32>
    %39 = arith.addf %37, %38 : vector<8x128xf32>
    %cst_20 = arith.constant 0.000000e+00 : f32
    %40 = vector.broadcast %cst_20 : f32 to vector<8x128xf32>
    %41 = arith.maximumf %39, %40 : vector<8x128xf32>
    %42 = vector.extract_strided_slice %9 {offsets = [3, 0, 0], sizes = [1, 8, 128], strides = [1, 1, 1]} : vector<8x8x128xf32> to vector<1x8x128xf32>
    %43 = vector.shape_cast %42 : vector<1x8x128xf32> to vector<8x128xf32>
    %44 = arith.addf %41, %43 : vector<8x128xf32>
    %cst_21 = arith.constant dense<0.000000e+00> : vector<8x128xf32>
    %45 = tpu.matmul %44, %10, %cst_21 {dimension_numbers = #tpu.dot_dimension_numbers<[1], [0], [0], [1], [0, 0, 1, 1], [], []>} : vector<8x128xf32>, vector<128x128xf32>, vector<8x128xf32> -> vector<8x128xf32>
    %46 = vector.broadcast %11 : vector<1x128xf32> to vector<8x128xf32>
    %47 = arith.addf %45, %46 : vector<8x128xf32>
    %cst_22 = arith.constant 0.000000e+00 : f32
    %48 = vector.broadcast %cst_22 : f32 to vector<8x128xf32>
    %49 = arith.maximumf %47, %48 : vector<8x128xf32>
    %50 = vector.extract_strided_slice %9 {offsets = [4, 0, 0], sizes = [1, 8, 128], strides = [1, 1, 1]} : vector<8x8x128xf32> to vector<1x8x128xf32>
    %51 = vector.shape_cast %50 : vector<1x8x128xf32> to vector<8x128xf32>
    %52 = arith.addf %49, %51 : vector<8x128xf32>
    %cst_23 = arith.constant dense<0.000000e+00> : vector<8x128xf32>
    %53 = tpu.matmul %52, %10, %cst_23 {dimension_numbers = #tpu.dot_dimension_numbers<[1], [0], [0], [1], [0, 0, 1, 1], [], []>} : vector<8x128xf32>, vector<128x128xf32>, vector<8x128xf32> -> vector<8x128xf32>
    %54 = vector.broadcast %11 : vector<1x128xf32> to vector<8x128xf32>
    %55 = arith.addf %53, %54 : vector<8x128xf32>
    %cst_24 = arith.constant 0.000000e+00 : f32
    %56 = vector.broadcast %cst_24 : f32 to vector<8x128xf32>
    %57 = arith.maximumf %55, %56 : vector<8x128xf32>
    %58 = vector.extract_strided_slice %9 {offsets = [5, 0, 0], sizes = [1, 8, 128], strides = [1, 1, 1]} : vector<8x8x128xf32> to vector<1x8x128xf32>
    %59 = vector.shape_cast %58 : vector<1x8x128xf32> to vector<8x128xf32>
    %60 = arith.addf %57, %59 : vector<8x128xf32>
    %cst_25 = arith.constant dense<0.000000e+00> : vector<8x128xf32>
    %61 = tpu.matmul %60, %10, %cst_25 {dimension_numbers = #tpu.dot_dimension_numbers<[1], [0], [0], [1], [0, 0, 1, 1], [], []>} : vector<8x128xf32>, vector<128x128xf32>, vector<8x128xf32> -> vector<8x128xf32>
    %62 = vector.broadcast %11 : vector<1x128xf32> to vector<8x128xf32>
    %63 = arith.addf %61, %62 : vector<8x128xf32>
    %cst_26 = arith.constant 0.000000e+00 : f32
    %64 = vector.broadcast %cst_26 : f32 to vector<8x128xf32>
    %65 = arith.maximumf %63, %64 : vector<8x128xf32>
    %66 = vector.extract_strided_slice %9 {offsets = [6, 0, 0], sizes = [1, 8, 128], strides = [1, 1, 1]} : vector<8x8x128xf32> to vector<1x8x128xf32>
    %67 = vector.shape_cast %66 : vector<1x8x128xf32> to vector<8x128xf32>
    %68 = arith.addf %65, %67 : vector<8x128xf32>
    %cst_27 = arith.constant dense<0.000000e+00> : vector<8x128xf32>
    %69 = tpu.matmul %68, %10, %cst_27 {dimension_numbers = #tpu.dot_dimension_numbers<[1], [0], [0], [1], [0, 0, 1, 1], [], []>} : vector<8x128xf32>, vector<128x128xf32>, vector<8x128xf32> -> vector<8x128xf32>
    %70 = vector.broadcast %11 : vector<1x128xf32> to vector<8x128xf32>
    %71 = arith.addf %69, %70 : vector<8x128xf32>
    %cst_28 = arith.constant 0.000000e+00 : f32
    %72 = vector.broadcast %cst_28 : f32 to vector<8x128xf32>
    %73 = arith.maximumf %71, %72 : vector<8x128xf32>
    %74 = vector.extract_strided_slice %9 {offsets = [7, 0, 0], sizes = [1, 8, 128], strides = [1, 1, 1]} : vector<8x8x128xf32> to vector<1x8x128xf32>
    %75 = vector.shape_cast %74 : vector<1x8x128xf32> to vector<8x128xf32>
    %76 = arith.addf %73, %75 : vector<8x128xf32>
    %c0_29 = arith.constant 0 : index
    %c0_30 = arith.constant 0 : index
    %77 = vector.load %arg6[%c0_29, %c0_30] : memref<128x128xf32, #tpu.memory_space<vmem>>, vector<128x128xf32>
    %cst_31 = arith.constant dense<0.000000e+00> : vector<8x128xf32>
    %78 = tpu.matmul %76, %77, %cst_31 {dimension_numbers = #tpu.dot_dimension_numbers<[1], [0], [0], [1], [0, 0, 1, 1], [], []>} : vector<8x128xf32>, vector<128x128xf32>, vector<8x128xf32> -> vector<8x128xf32>
    %c0_32 = arith.constant 0 : index
    %c0_33 = arith.constant 0 : index
    %79 = vector.load %arg7[%c0_32, %c0_33] : memref<1x128xf32, #tpu.memory_space<vmem>>, vector<1x128xf32>
    %80 = vector.broadcast %79 : vector<1x128xf32> to vector<8x128xf32>
    %81 = arith.addf %78, %80 : vector<8x128xf32>
    %c0_34 = arith.constant 0 : index
    %c0_35 = arith.constant 0 : index
    %82 = vector.load %arg8[%c0_34, %c0_35] : memref<8x128xf32, #tpu.memory_space<vmem>>, vector<8x128xf32>
    tpu.vector_store %arg8[%c0_34, %c0_35], %81 {strides = array<i32>} : memref<8x128xf32, #tpu.memory_space<vmem>>, vector<8x128xf32>,
    return
  }
}

</mosaic_0001>

<bundles_post_ra>
// kernel: tpu_custom_call.1
= control target key start
LH: loop header
LB: loop body
LE: loop exit
PB: predicated region body
PF: predicated region fallthrough
CT: control target
= control target key end

     0   :  { %13 = vsyncpa [#allocation3], 0  ;;  %s2243_s0 = inlined_call_operand.hbm [shape: f32[8,8,128], index: 0, kind: input, shape index: {}]   ;;  %s2244_s1 = inlined_call_operand.hbm [shape: f32[8,128], index: 1, kind: input, shape index: {}]   ;;  %s2245_s2 = inlined_call_operand.hbm [shape: f32[128,128], index: 2, kind: input, shape index: {}]   ;;  %s2246_s3 = inlined_call_operand.vmem [shape: f32[1,128], index: 3, kind: input, shape index: {}]   ;;  %s2247_s4 = inlined_call_operand.hbm [shape: f32[128,128], index: 4, kind: input, shape index: {}]   ;;  %s2248_s5 = inlined_call_operand.vmem [shape: f32[1,128], index: 5, kind: input, shape index: {}]   ;;  %s2249_s6 = inlined_call_operand.hbm [shape: f32[128,128], index: 6, kind: input, shape index: {}]   ;;  %s2250_s7 = inlined_call_operand.vmem [shape: f32[1,128], index: 7, kind: input, shape index: {}]   ;;  %s2251_s8 = inlined_call_operand.hbm [shape: f32[8,128], index: 8, kind: output, shape index: {}]  }
   0x1   :  { %14 = vsyncpa [#allocation6], 0 }
   0x2   :  { %15 = vsyncpa [#allocation9], 0 }
   0x3   :  { %16 = vsyncpa [#allocation4], 0  ;;  %s1889_s27 = smov [#allocation5]   ;;  %s1749_s9 = scalar_lea.hbm %s2244_s1, 128 }
   0x4   :  { %s35_s28 = sshll.u32 %s1889_s27, 4  ;;  %p1750_p0 = scmp.ne.s32.totalorder %s2244_s1, %s1749_s9  ;;  %s36_s28 = int_to_ptr.vmem [resolvable:$true] %s35_s28 }
   0x5   :  { %p1753_p1 = scmp.lt.u32.totalorder %s1749_s9, %s2244_s1 }
   0x7   :  { %p1755_p2 = pnand %p1753_p1, %p1750_p0 }
   0x9   :  { %1758 = shalt.err (!%p1755_p2)
}
   0xa   :  { %s1759_s14 = scalar_lea.vmem %s36_s28, 128  ;;  %p1764_p4 = scmp.lt.s32.totalorder %s36_s28, %s36_s28 }
   0xb   :  { %p1760_p3 = scmp.ne.s32.totalorder %s36_s28, %s1759_s14  ;;  %p1765_p5 = scmp.lt.s32.totalorder %s1759_s14, %s1759_s14 }
   0xd   :  { %p1766_p6 = por %p1765_p5, %p1764_p4 }
   0xf   :  { %p1767_p7 = pnand %p1766_p6, %p1760_p3 }
  0x11   :  { %1770 = shalt.err (!%p1767_p7)
}
  0x12   :  { %38 = dma.hbm_to_vmem [thread:$0]  %s2244_s1, 128, %s36_s28, [#allocation6]  }
  0x13   :  { %s1890_s17 = smov [#allocation8]   ;;  %s1891_s19 = smov [#allocation2]  }
  0x14   :  { %s58_s18 = sshll.u32 %s1890_s17, 4  ;;  %s22_s20 = sshll.u32 %s1891_s19, 4  ;;  %s59_s18 = int_to_ptr.vmem [resolvable:$true] %s58_s18  ;;  %s23_s20 = int_to_ptr.vmem [resolvable:$true] %s22_s20 }
  0x15   :  { %s1771_s23 = scalar_lea.hbm %s2247_s4, 2048 }
  0x16   :  { %p1772_p8 = scmp.ne.s32.totalorder %s2247_s4, %s1771_s23  ;;  %p1775_p9 = scmp.lt.u32.totalorder %s1771_s23, %s2247_s4 }
  0x18   :  { %p1777_p10 = pnand %p1775_p9, %p1772_p8 }
  0x1a   :  { %1780 = shalt.err (!%p1777_p10)
}
  0x1b   :  { %s1781_s1 = scalar_lea.vmem %s59_s18, 2048  ;;  %p1786_p12 = scmp.lt.s32.totalorder %s59_s18, %s59_s18 }
  0x1c   :  { %p1782_p11 = scmp.ne.s32.totalorder %s59_s18, %s1781_s1  ;;  %p1787_p13 = scmp.lt.s32.totalorder %s1781_s1, %s1781_s1 }
  0x1e   :  { %p1788_p0 = por %p1787_p13, %p1786_p12 }
  0x20   :  { %p1789_p1 = pnand %p1788_p0, %p1782_p11 }
  0x22   :  { %1792 = shalt.err (!%p1789_p1)
}
  0x23   :  { %s1892_s28 = smov 128   ;;  %s1893_s29 = smov 8  }
  0x24   :  { %64 = dma.hbm_to_vmem [thread:$0]  %s2247_s4, 2048, %s59_s18, [#allocation9], %s1892_s28, %s1892_s28, %s1893_s29  }
  0x25   :  { %s1793_s12 = scalar_lea.hbm %s2243_s0, 1024 }
  0x26   :  { %p1794_p2 = scmp.ne.s32.totalorder %s2243_s0, %s1793_s12  ;;  %p1797_p3 = scmp.lt.u32.totalorder %s1793_s12, %s2243_s0 }
  0x28   :  { %p1799_p4 = pnand %p1797_p3, %p1794_p2 }
  0x2a   :  { %1802 = shalt.err (!%p1799_p4)
}
  0x2b   :  { %s1803_s17 = scalar_lea.vmem %s23_s20, 1024  ;;  %p1808_p6 = scmp.lt.s32.totalorder %s23_s20, %s23_s20 }
  0x2c   :  { %p1804_p5 = scmp.ne.s32.totalorder %s23_s20, %s1803_s17  ;;  %p1809_p7 = scmp.lt.s32.totalorder %s1803_s17, %s1803_s17 }
  0x2e   :  { %p1810_p8 = por %p1809_p7, %p1808_p6 }
  0x30   :  { %p1811_p9 = pnand %p1810_p8, %p1804_p5 }
  0x32   :  { %1814 = shalt.err (!%p1811_p9)
}
  0x33   :  { %28 = dma.hbm_to_vmem [thread:$0]  %s2243_s0, 1024, %s23_s20, [#allocation3], %s1892_s28, %s1892_s28, %s1893_s29  }
  0x34   :  { %s1894_s19 = smov [#allocation7]   ;;  %s1895_s22 = smov [#allocation10]  }
  0x35   :  { %s44_s21 = sshll.u32 %s1894_s19, 4  ;;  %s72_s23 = sshll.u32 %s1895_s22, 4  ;;  %s45_s21 = int_to_ptr.vmem [resolvable:$true] %s44_s21  ;;  %s73_s23 = int_to_ptr.vmem [resolvable:$true] %s72_s23 }
  0x36   :  { %s1815_s26 = scalar_lea.hbm %s2245_s2, 2048 }
  0x37   :  { %p1816_p10 = scmp.ne.s32.totalorder %s2245_s2, %s1815_s26  ;;  %p1819_p11 = scmp.lt.u32.totalorder %s1815_s26, %s2245_s2 }
  0x39   :  { %p1821_p12 = pnand %p1819_p11, %p1816_p10 }
  0x3b   :  { %1824 = shalt.err (!%p1821_p12)
}
  0x3c   :  { %s1825_s0 = scalar_lea.vmem %s45_s21, 2048  ;;  %p1830_p0 = scmp.lt.s32.totalorder %s45_s21, %s45_s21 }
  0x3d   :  { %p1826_p13 = scmp.ne.s32.totalorder %s45_s21, %s1825_s0  ;;  %p1831_p1 = scmp.lt.s32.totalorder %s1825_s0, %s1825_s0 }
  0x3f   :  { %p1832_p2 = por %p1831_p1, %p1830_p0 }
  0x41   :  { %p1833_p3 = pnand %p1832_p2, %p1826_p13 }
  0x43   :  { %1836 = shalt.err (!%p1833_p3)
}
  0x44   :  { %50 = dma.hbm_to_vmem [thread:$0]  %s2245_s2, 2048, %s45_s21, [#allocation6], %s1892_s28, %s1892_s28, %s1893_s29  }
  0x45   :  { %s1837_s13 = scalar_lea.hbm %s2249_s6, 2048 }
  0x46   :  { %p1838_p4 = scmp.ne.s32.totalorder %s2249_s6, %s1837_s13  ;;  %p1841_p5 = scmp.lt.u32.totalorder %s1837_s13, %s2249_s6 }
  0x48   :  { %p1843_p6 = pnand %p1841_p5, %p1838_p4 }
  0x4a   :  { %1846 = shalt.err (!%p1843_p6)
}
  0x4b   :  { %s1847_s4 = scalar_lea.vmem %s73_s23, 2048  ;;  %p1852_p8 = scmp.lt.s32.totalorder %s73_s23, %s73_s23 }
  0x4c   :  { %p1848_p7 = scmp.ne.s32.totalorder %s73_s23, %s1847_s4  ;;  %p1853_p9 = scmp.lt.s32.totalorder %s1847_s4, %s1847_s4 }
  0x4e   :  { %p1854_p10 = por %p1853_p9, %p1852_p8 }
  0x50   :  { %p1855_p11 = pnand %p1854_p10, %p1848_p7 }
  0x52   :  { %1858 = shalt.err (!%p1855_p11)
}
  0x53   :  { %78 = dma.hbm_to_vmem [thread:$0]  %s2249_s6, 2048, %s73_s23, [#allocation9], %s1892_s28, %s1892_s28, %s1893_s29  }
  0x54   :  { %1881 = dma.done.wait [#allocation3], 1024  }
  0x55   :  { %1882 = vsyncadd [#allocation3], 4294966272 }
  0x56   :  { %1883 = dma.done.wait [#allocation6], 2176  }
  0x57   :  { %1884 = vsyncadd [#allocation6], 4294965120 }
  0x58   :  { %1885 = dma.done.wait [#allocation9], 4096  }
  0x59   :  { %1886 = vsyncadd [#allocation9], 4294963200  ;;  %v1896_v0 = vmov 0.0|0.0   ;;  %vm1897_vm0 = vmmov 0   ;;  %v1898_v1 = vmov 0.0   ;;  %v104_v2 = vld [vmem:[#allocation7] sm:$0xff] }
  0x5a   :  { %1522 = vmatprep.subr.bf16.mxu1 %v1896_v0  ;;  %1207 = vmatprep.mubr.msk.f32.mxu1 %vm1897_vm0, %v1898_v1  ;;  %v105_v3 = vld [vmem:[#allocation7 + $0x8] sm:$0xff]  ;;  %v240_v4 = vld [vmem:[#allocation8] sm:$0xff]  ;;  %v106_v7 = vld [vmem:[#allocation7 + $0x10] sm:$0xff]  ;;  %s1899_s21 = smov [#allocation11]  }
  0x5b   :  { %v1490_v5 = vpack.c.bf16 %v105_v3, %v104_v2  ;;  %v241_v6 = vld [vmem:[#allocation8 + $0x8] sm:$0xff]  ;;  %v107_v8 = vld [vmem:[#allocation7 + $0x18] sm:$0xff]  ;;  %v242_v11 = vld [vmem:[#allocation8 + $0x10] sm:$0xff]  ;;  %s940_s22 = sshll.u32 %s1899_s21, 4  ;;  %s941_s22 = int_to_ptr.vmem [resolvable:$true] %s940_s22 }
  0x5c   :  { %v2020_v9 = vpack.c.bf16 %v241_v6, %v240_v4  ;;  %v1494_v10 = vpack.c.bf16 %v107_v8, %v106_v7  ;;  %v243_v12 = vld [vmem:[#allocation8 + $0x18] sm:$0xff]  ;;  %v108_v13 = vld [vmem:[#allocation7 + $0x20] sm:$0xff]  ;;  %v109_v14 = vld [vmem:[#allocation7 + $0x28] sm:$0xff]  ;;  %s1859_s23 = scalar_lea.vmem %s941_s22, 128  ;;  %p1864_p13 = scmp.lt.s32.totalorder %s941_s22, %s941_s22 }
  0x5d   :  { %1491 = vmatprep.subr.bf16.mxu0 %v1490_v5  ;;  %v2023_v15 = vpack.c.bf16 %v243_v12, %v242_v11  ;;  %v1498_v16 = vpack.c.bf16 %v109_v14, %v108_v13  ;;  %v244_v17 = vld [vmem:[#allocation8 + $0x20] sm:$0xff]  ;;  %v245_v18 = vld [vmem:[#allocation8 + $0x28] sm:$0xff]  ;;  %v110_v19 = vld [vmem:[#allocation7 + $0x30] sm:$0xff]  ;;  %p1860_p12 = scmp.ne.s32.totalorder %s941_s22, %s1859_s23  ;;  %p1865_p0 = scmp.lt.s32.totalorder %s1859_s23, %s1859_s23 }
  0x5e   :  { %1493 = vmatpush3.bf16.msra.mxu0 %v1490_v5  ;;  %1524 = vmatpush3.bf16.msra.mxu1 %v2020_v9  ;;  %v111_v20 = vld [vmem:[#allocation7 + $0x38] sm:$0xff]  ;;  %v2027_v21 = vpack.c.bf16 %v245_v18, %v244_v17  ;;  %v246_v23 = vld [vmem:[#allocation8 + $0x30] sm:$0xff]  ;;  %v112_v25 = vld [vmem:[#allocation7 + $0x40] sm:$0xff] }
  0x5f   :  { %1495 = vmatprep.subr.bf16.mxu0 %v1494_v10  ;;  %1525 = vmatprep.subr.bf16.mxu1 %v1896_v0  ;;  %v1502_v22 = vpack.c.bf16 %v111_v20, %v110_v19  ;;  %v247_v24 = vld [vmem:[#allocation8 + $0x38] sm:$0xff]  ;;  %v113_v26 = vld [vmem:[#allocation7 + $0x48] sm:$0xff]  ;;  %v248_v30 = vld [vmem:[#allocation8 + $0x40] sm:$0xff]  ;;  %p1866_p1 = por %p1865_p0, %p1864_p13 }
  0x60   :  { %v96_v27 = vld [vmem:[#allocation2] sm:$0xff]  ;;  %v2031_v28 = vpack.c.bf16 %v247_v24, %v246_v23  ;;  %v1506_v29 = vpack.c.bf16 %v113_v26, %v112_v25  ;;  %v249_v31 = vld [vmem:[#allocation8 + $0x48] sm:$0xff]  ;;  %v114_v32 = vld [vmem:[#allocation7 + $0x50] sm:$0xff] }
  0x61   :  { %1163 = vmatprep.mubr.f32.mxu0 %v96_v27  ;;  %v115_v33 = vld [vmem:[#allocation7 + $0x58] sm:$0xff]  ;;  %v2035_v34 = vpack.c.bf16 %v249_v31, %v248_v30  ;;  %v250_v36 = vld [vmem:[#allocation8 + $0x50] sm:$0xff]  ;;  %v116_v38 = vld [vmem:[#allocation7 + $0x60] sm:$0xff]  ;;  %p1867_p2 = pnand %p1866_p1, %p1860_p12 }
  0x62   :  { %1497 = vmatpush3.bf16.msra.mxu0 %v1494_v10  ;;  %1527 = vmatpush3.bf16.msra.mxu1 %v2023_v15  ;;  %v1510_v35 = vpack.c.bf16 %v115_v33, %v114_v32  ;;  %v251_v37 = vld [vmem:[#allocation8 + $0x58] sm:$0xff]  ;;  %v117_v39 = vld [vmem:[#allocation7 + $0x68] sm:$0xff]  ;;  %v252_v42 = vld [vmem:[#allocation8 + $0x60] sm:$0xff] }
  0x63   :  { %1499 = vmatprep.subr.bf16.mxu0 %v1498_v16  ;;  %1528 = vmatprep.subr.bf16.mxu1 %v1896_v0  ;;  %v2039_v40 = vpack.c.bf16 %v251_v37, %v250_v36  ;;  %v1514_v41 = vpack.c.bf16 %v117_v39, %v116_v38  ;;  %v253_v43 = vld [vmem:[#allocation8 + $0x68] sm:$0xff]  ;;  %v118_v44 = vld [vmem:[#allocation7 + $0x70] sm:$0xff]  ;;  %v119_v45 = vld [vmem:[#allocation7 + $0x78] sm:$0xff] }
  0x64   :  { %v2043_v46 = vpack.c.bf16 %v253_v43, %v252_v42  ;;  %v1518_v47 = vpack.c.bf16 %v119_v45, %v118_v44  ;;  %v254_v48 = vld [vmem:[#allocation8 + $0x70] sm:$0xff]  ;;  %v255_v49 = vld [vmem:[#allocation8 + $0x78] sm:$0xff]  ;;  %v97_v51 = vld [vmem:[#allocation2 + $0x8] sm:$0xff] }
  0x65   :  { %v2047_v50 = vpack.c.bf16 %v255_v49, %v254_v48  ;;  %v257_v52 = vld [vmem:[#allocation5] sm:$0xff]  ;;  %v98_v53 = vld [vmem:[#allocation2 + $0x10] sm:$0xff]  ;;  %v99_v54 = vld [vmem:[#allocation2 + $0x18] sm:$0xff] }
  0x66   :  { %1501 = vmatpush3.bf16.msra.mxu0 %v1498_v16  ;;  %1530 = vmatpush3.bf16.msra.mxu1 %v2027_v21  ;;  %v100_v55 = vld [vmem:[#allocation2 + $0x20] sm:$0xff]  ;;  %v101_v56 = vld [vmem:[#allocation2 + $0x28] sm:$0xff]  ;;  %v102_v57 = vld [vmem:[#allocation2 + $0x30] sm:$0xff] }
  0x67   :  { %1503 = vmatprep.subr.bf16.mxu0 %v1502_v22  ;;  %1531 = vmatprep.subr.bf16.mxu1 %v1896_v0  ;;  %v103_v58 = vld [vmem:[#allocation2 + $0x38] sm:$0xff]  ;;  %v2092_v59 = vld [vmem:[%s2248_s5] ss:$0 sm:$0xff] }
  0x68   :  { %v2097_v60 = vld [vmem:[%s2246_s3] ss:$0 sm:$0xff] }
  0x6a   :  { %1505 = vmatpush3.bf16.msra.mxu0 %v1502_v22  ;;  %1533 = vmatpush3.bf16.msra.mxu1 %v2031_v28 }
  0x6b   :  { %1507 = vmatprep.subr.bf16.mxu0 %v1506_v29  ;;  %1534 = vmatprep.subr.bf16.mxu1 %v1896_v0 }
  0x6e   :  { %1509 = vmatpush3.bf16.msra.mxu0 %v1506_v29  ;;  %1536 = vmatpush3.bf16.msra.mxu1 %v2035_v34 }
  0x6f   :  { %1511 = vmatprep.subr.bf16.mxu0 %v1510_v35  ;;  %1537 = vmatprep.subr.bf16.mxu1 %v1896_v0 }
  0x72   :  { %1513 = vmatpush3.bf16.msra.mxu0 %v1510_v35  ;;  %1539 = vmatpush3.bf16.msra.mxu1 %v2039_v40 }
  0x73   :  { %1515 = vmatprep.subr.bf16.mxu0 %v1514_v41  ;;  %1540 = vmatprep.subr.bf16.mxu1 %v1896_v0 }
  0x76   :  { %1517 = vmatpush3.bf16.msra.mxu0 %v1514_v41  ;;  %1542 = vmatpush3.bf16.msra.mxu1 %v2043_v46 }
  0x77   :  { %1519 = vmatprep.subr.bf16.mxu0 %v1518_v47  ;;  %1543 = vmatprep.subr.bf16.mxu1 %v1896_v0 }
  0x7a   :  { %1521 = vmatpush3.bf16.msra.mxu0 %v1518_v47  ;;  %1545 = vmatpush3.bf16.msra.mxu1 %v2047_v50 }
  0x7b   :  { %1546 = vmatprep.subr.bf16.mxu0 %v1896_v0  ;;  %1570 = vmatprep.subr.bf16.mxu1 %v1896_v0 }
  0x7d   :  { %1164 = vmatmul.mubr.f32.vlgmr.msra.gmra.mrb[0].mxu0 %v97_v51  ;;  %1208 = vmatmul.mubr.f32.vlgmr.msra.gmra.mrb[0].mxu1 %v257_v52  ;;  %v842_v52 = vld [vmem:[#allocation10 + $0x10] sm:$0xff] }
  0x7e   :  { %1548 = vmatpush3.bf16.msra.mxu0 %v2020_v9  ;;  %1166 = vmatprep.mubr.f32.mxu0 %v98_v53 }
  0x7f   :  { %1549 = vmatprep.subr.bf16.mxu0 %v1896_v0  ;;  %1572 = vmatpush3.bf16.msra.mxu1 %v2020_v9 }
  0x80   :  { %1573 = vmatprep.subr.bf16.mxu1 %v1896_v0  ;;  %1277 = vmatprep.mubr.msk.f32.mxu1 %vm1897_vm0, %v1898_v1 }
  0x81   :  { %1167 = vmatmul.mubr.f32.gmra.mrb[2].mxu0 %v99_v54  ;;  %v843_v54 = vld [vmem:[#allocation10 + $0x18] sm:$0xff] }
  0x82   :  { %1551 = vmatpush3.bf16.msra.mxu0 %v2023_v15  ;;  %1169 = vmatprep.mubr.f32.mxu0 %v100_v55  ;;  %v844_v55 = vld [vmem:[#allocation10 + $0x20] sm:$0xff] }
  0x83   :  { %1552 = vmatprep.subr.bf16.mxu0 %v1896_v0  ;;  %1575 = vmatpush3.bf16.msra.mxu1 %v2023_v15 }
  0x84   :  { %1576 = vmatprep.subr.bf16.mxu1 %v1896_v0 }
  0x85   :  { %1170 = vmatmul.mubr.f32.gmra.mrb[4].mxu0 %v101_v56  ;;  %v845_v56 = vld [vmem:[#allocation10 + $0x28] sm:$0xff] }
  0x86   :  { %1554 = vmatpush3.bf16.msra.mxu0 %v2027_v21  ;;  %1172 = vmatprep.mubr.f32.mxu0 %v102_v57  ;;  %v1721_v57 = vpack.c.bf16 %v845_v56, %v844_v55 }
  0x87   :  { %1555 = vmatprep.subr.bf16.mxu0 %v1896_v0  ;;  %1578 = vmatpush3.bf16.msra.mxu1 %v2027_v21 }
  0x88   :  { %1579 = vmatprep.subr.bf16.mxu1 %v1896_v0 }
  0x89   :  { %1173 = vmatmul.mubr.f32.gmra.mrb[6].mxu0 %v103_v58  ;;  %v846_v58 = vld [vmem:[#allocation10 + $0x30] sm:$0xff] }
  0x8a   :  { %1557 = vmatpush3.bf16.msra.mxu0 %v2031_v28  ;;  %1242 = vmatprep.mubr.msk.f32.mxu0 %vm1897_vm0, %v1898_v1 }
  0x8b   :  { %1558 = vmatprep.subr.bf16.mxu0 %v1896_v0  ;;  %1581 = vmatpush3.bf16.msra.mxu1 %v2031_v28 }
  0x8c   :  { %1582 = vmatprep.subr.bf16.mxu1 %v1896_v0 }
  0x8e   :  { %1560 = vmatpush3.bf16.msra.mxu0 %v2035_v34 }
  0x8f   :  { %1561 = vmatprep.subr.bf16.mxu0 %v1896_v0  ;;  %1584 = vmatpush3.bf16.msra.mxu1 %v2035_v34 }
  0x90   :  { %1585 = vmatprep.subr.bf16.mxu1 %v1896_v0 }
  0x92   :  { %1563 = vmatpush3.bf16.msra.mxu0 %v2039_v40 }
  0x93   :  { %1564 = vmatprep.subr.bf16.mxu0 %v1896_v0  ;;  %1587 = vmatpush3.bf16.msra.mxu1 %v2039_v40 }
  0x94   :  { %1588 = vmatprep.subr.bf16.mxu1 %v1896_v0 }
  0x96   :  { %1566 = vmatpush3.bf16.msra.mxu0 %v2043_v46 }
  0x97   :  { %1567 = vmatprep.subr.bf16.mxu0 %v1896_v0  ;;  %1590 = vmatpush3.bf16.msra.mxu1 %v2043_v46 }
  0x98   :  { %1591 = vmatprep.subr.bf16.mxu1 %v1896_v0 }
  0x9a   :  { %1569 = vmatpush3.bf16.msra.mxu0 %v2047_v50 }
  0x9b   :  { %1593 = vmatpush3.bf16.msra.mxu1 %v2047_v50  ;;  %1594 = vmatprep.subr.bf16.mxu0 %v1896_v0 }
  0x9c   :  { %1618 = vmatprep.subr.bf16.mxu1 %v1896_v0 }
 0x150   :  { %v1165_v61 = vpop.f32.mrb[0].mxu0  ;;  %v330_v62 = vpop.f32.mrb[0].mxu1 }
 0x151   :  { %v331_v63 = vadd.f32 %v2092_v59, %v330_v62  ;;  %v193_v2 = vpop.f32.mrb[1].mxu0  ;;  %v1209_v3 = vpop.f32.mrb[1].mxu1  ;;  %v199_v16 = vadd.f32 %v1165_v61, %v2097_v60  ;;  %v847_v61 = vld [vmem:[#allocation10 + $0x38] sm:$0xff] }
 0x152   :  { %v194_v4 = vadd.f32 %v2097_v60, %v193_v2  ;;  %v1724_v62 = vpack.c.bf16 %v847_v61, %v846_v58  ;;  %v850_v3 = vld [vmem:[#allocation10 + $0x50] sm:$0xff] }
 0x153   :  { %v334_v5 = vmax.f32 %v331_v63, 0.0  ;;  %v233_v20 = vmax.f32 %v199_v16, 0.0  ;;  %v849_v63 = vld [vmem:[#allocation10 + $0x48] sm:$0xff] }
 0x154   :  { %v232_v6 = vmax.f32 %v194_v4, 0.0  ;;  %v2101_v7 = vpop.f32.mrb[2].mxu0  ;;  %v851_v4 = vld [vmem:[#allocation10 + $0x58] sm:$0xff] }
 0x155   :  { %v203_v8 = vpop.f32.mrb[3].mxu0  ;;  %v209_v32 = vadd.f32 %v2101_v7, %v2097_v60 }
 0x156   :  { %v335_v10 = vadd.f32 %v334_v5, %v232_v6  ;;  %v204_v24 = vadd.f32 %v2097_v60, %v203_v8  ;;  %v1730_v5 = vpack.c.bf16 %v851_v4, %v850_v3 }
 0x157   :  { %v235_v37 = vmax.f32 %v209_v32, 0.0 }
 0x158   :  { %1243 = vmatmul.mubr.f32.vlgmr.msra.gmra.mrb[8].mxu0 %v335_v10  ;;  %v2103_v11 = vpop.f32.mrb[4].mxu0  ;;  %v234_v29 = vmax.f32 %v204_v24, 0.0 }
 0x159   :  { %v2105_v12 = vpop.f32.mrb[5].mxu0  ;;  %1596 = vmatpush3.bf16.msra.mxu0 %v2020_v9  ;;  %1312 = vmatprep.mubr.msk.f32.mxu0 %vm1897_vm0, %v1898_v1 }
 0x15a   :  { %1597 = vmatprep.subr.bf16.mxu0 %v1896_v0  ;;  %v214_v41 = vadd.f32 %v2097_v60, %v2105_v12 }
 0x15c   :  { %v2125_v13 = vpop.f32.mrb[6].mxu0  ;;  %v236_v45 = vmax.f32 %v214_v41, 0.0 }
 0x15d   :  { %1599 = vmatpush3.bf16.msra.mxu0 %v2023_v15  ;;  %v2127_v14 = vpop.f32.mrb[7].mxu0 }
 0x15e   :  { %1600 = vmatprep.subr.bf16.mxu0 %v1896_v0  ;;  %v224_v6 = vadd.f32 %v2097_v60, %v2127_v14  ;;  %v229_v14 = vadd.f32 %v2125_v13, %v2097_v60 }
 0x161   :  { %1602 = vmatpush3.bf16.msra.mxu0 %v2027_v21 }
 0x162   :  { %1603 = vmatprep.subr.bf16.mxu0 %v1896_v0 }
 0x165   :  { %1605 = vmatpush3.bf16.msra.mxu0 %v2031_v28 }
 0x166   :  { %1606 = vmatprep.subr.bf16.mxu0 %v1896_v0 }
 0x169   :  { %1608 = vmatpush3.bf16.msra.mxu0 %v2035_v34 }
 0x16a   :  { %1609 = vmatprep.subr.bf16.mxu0 %v1896_v0 }
 0x16d   :  { %1611 = vmatpush3.bf16.msra.mxu0 %v2039_v40 }
 0x16e   :  { %1612 = vmatprep.subr.bf16.mxu0 %v1896_v0 }
 0x171   :  { %1614 = vmatpush3.bf16.msra.mxu0 %v2043_v46 }
 0x172   :  { %1615 = vmatprep.subr.bf16.mxu0 %v1896_v0 }
 0x175   :  { %1617 = vmatpush3.bf16.msra.mxu0 %v2047_v50 }
 0x176   :  { %1642 = vmatprep.subr.bf16.mxu0 %v1896_v0 }
 0x22b   :  { %v402_v17 = vpop.f32.mrb[8].mxu0 }
 0x22c   :  { %v403_v18 = vadd.f32 %v2092_v59, %v402_v17  ;;  %v1244_v19 = vpop.f32.mrb[9].mxu0  ;;  %v852_v17 = vld [vmem:[#allocation10 + $0x60] sm:$0xff] }
 0x22e   :  { %v406_v22 = vmax.f32 %v403_v18, 0.0  ;;  %v853_v18 = vld [vmem:[#allocation10 + $0x68] sm:$0xff] }
 0x22f   :  { %v1733_v19 = vpack.c.bf16 %v853_v18, %v852_v17 }
 0x230   :  { %v407_v23 = vadd.f32 %v406_v22, %v233_v20  ;;  %v854_v20 = vld [vmem:[#allocation10 + $0x70] sm:$0xff]  ;;  %v855_v22 = vld [vmem:[#allocation10 + $0x78] sm:$0xff] }
 0x232   :  { %1278 = vmatmul.mubr.f32.vlgmr.msra.gmra.mrb[2].mxu1 %v407_v23  ;;  %v1736_v23 = vpack.c.bf16 %v855_v22, %v854_v20 }
 0x233   :  { %1620 = vmatpush3.bf16.msra.mxu1 %v2020_v9  ;;  %1347 = vmatprep.mubr.msk.f32.mxu1 %vm1897_vm0, %v1898_v1 }
 0x234   :  { %1621 = vmatprep.subr.bf16.mxu1 %v1896_v0 }
 0x237   :  { %1623 = vmatpush3.bf16.msra.mxu1 %v2023_v15 }
 0x238   :  { %1624 = vmatprep.subr.bf16.mxu1 %v1896_v0 }
 0x23b   :  { %1626 = vmatpush3.bf16.msra.mxu1 %v2027_v21 }
 0x23c   :  { %1627 = vmatprep.subr.bf16.mxu1 %v1896_v0 }
 0x23f   :  { %1629 = vmatpush3.bf16.msra.mxu1 %v2031_v28 }
 0x240   :  { %1630 = vmatprep.subr.bf16.mxu1 %v1896_v0 }
 0x243   :  { %1632 = vmatpush3.bf16.msra.mxu1 %v2035_v34 }
 0x244   :  { %1633 = vmatprep.subr.bf16.mxu1 %v1896_v0 }
 0x247   :  { %1635 = vmatpush3.bf16.msra.mxu1 %v2039_v40 }
 0x248   :  { %1636 = vmatprep.subr.bf16.mxu1 %v1896_v0 }
 0x24b   :  { %1638 = vmatpush3.bf16.msra.mxu1 %v2043_v46 }
 0x24c   :  { %1639 = vmatprep.subr.bf16.mxu1 %v1896_v0 }
 0x24f   :  { %1641 = vmatpush3.bf16.msra.mxu1 %v2047_v50 }
 0x250   :  { %1666 = vmatprep.subr.bf16.mxu1 %v1896_v0 }
 0x305   :  { %v474_v25 = vpop.f32.mrb[2].mxu1 }
 0x306   :  { %v475_v26 = vadd.f32 %v2092_v59, %v474_v25  ;;  %v1279_v27 = vpop.f32.mrb[3].mxu1 }
 0x307   :  { %v239_v27 = vmax.f32 %v229_v14, 0.0 }
 0x308   :  { %v478_v30 = vmax.f32 %v475_v26, 0.0 }
 0x30a   :  { %v479_v31 = vadd.f32 %v478_v30, %v234_v29 }
 0x30c   :  { %1313 = vmatmul.mubr.f32.vlgmr.msra.gmra.mrb[10].mxu0 %v479_v31  ;;  %v953_v31 = vld [vmem:[%s2250_s7] ss:$0 sm:$0xff] }
 0x30d   :  { %1644 = vmatpush3.bf16.msra.mxu0 %v2020_v9  ;;  %1382 = vmatprep.mubr.msk.f32.mxu0 %vm1897_vm0, %v1898_v1 }
 0x30e   :  { %1645 = vmatprep.subr.bf16.mxu0 %v1896_v0 }
 0x311   :  { %1647 = vmatpush3.bf16.msra.mxu0 %v2023_v15 }
 0x312   :  { %1648 = vmatprep.subr.bf16.mxu0 %v1896_v0 }
 0x315   :  { %1650 = vmatpush3.bf16.msra.mxu0 %v2027_v21 }
 0x316   :  { %1651 = vmatprep.subr.bf16.mxu0 %v1896_v0 }
 0x319   :  { %1653 = vmatpush3.bf16.msra.mxu0 %v2031_v28 }
 0x31a   :  { %1654 = vmatprep.subr.bf16.mxu0 %v1896_v0 }
 0x31d   :  { %1656 = vmatpush3.bf16.msra.mxu0 %v2035_v34 }
 0x31e   :  { %1657 = vmatprep.subr.bf16.mxu0 %v1896_v0 }
 0x321   :  { %1659 = vmatpush3.bf16.msra.mxu0 %v2039_v40 }
 0x322   :  { %1660 = vmatprep.subr.bf16.mxu0 %v1896_v0 }
 0x325   :  { %1662 = vmatpush3.bf16.msra.mxu0 %v2043_v46 }
 0x326   :  { %1663 = vmatprep.subr.bf16.mxu0 %v1896_v0 }
 0x329   :  { %1665 = vmatpush3.bf16.msra.mxu0 %v2047_v50 }
 0x32a   :  { %1690 = vmatprep.subr.bf16.mxu0 %v1896_v0 }
 0x3df   :  { %v546_v33 = vpop.f32.mrb[10].mxu0 }
 0x3e0   :  { %v547_v35 = vadd.f32 %v2092_v59, %v546_v33  ;;  %v1314_v36 = vpop.f32.mrb[11].mxu0 }
 0x3e2   :  { %v550_v38 = vmax.f32 %v547_v35, 0.0 }
 0x3e4   :  { %v551_v39 = vadd.f32 %v550_v38, %v235_v37 }
 0x3e6   :  { %1348 = vmatmul.mubr.f32.vlgmr.msra.gmra.mrb[4].mxu1 %v551_v39 }
 0x3e7   :  { %1668 = vmatpush3.bf16.msra.mxu1 %v2020_v9  ;;  %1417 = vmatprep.mubr.msk.f32.mxu1 %vm1897_vm0, %v1898_v1 }
 0x3e8   :  { %1669 = vmatprep.subr.bf16.mxu1 %v1896_v0 }
 0x3eb   :  { %1671 = vmatpush3.bf16.msra.mxu1 %v2023_v15 }
 0x3ec   :  { %1672 = vmatprep.subr.bf16.mxu1 %v1896_v0 }
 0x3ef   :  { %1674 = vmatpush3.bf16.msra.mxu1 %v2027_v21 }
 0x3f0   :  { %1675 = vmatprep.subr.bf16.mxu1 %v1896_v0 }
 0x3f3   :  { %1677 = vmatpush3.bf16.msra.mxu1 %v2031_v28 }
 0x3f4   :  { %1678 = vmatprep.subr.bf16.mxu1 %v1896_v0 }
 0x3f7   :  { %1680 = vmatpush3.bf16.msra.mxu1 %v2035_v34 }
 0x3f8   :  { %1681 = vmatprep.subr.bf16.mxu1 %v1896_v0 }
 0x3fb   :  { %1683 = vmatpush3.bf16.msra.mxu1 %v2039_v40 }
 0x3fc   :  { %1684 = vmatprep.subr.bf16.mxu1 %v1896_v0 }
 0x3ff   :  { %1686 = vmatpush3.bf16.msra.mxu1 %v2043_v46 }
 0x400   :  { %1687 = vmatprep.subr.bf16.mxu1 %v1896_v0 }
 0x403   :  { %1689 = vmatpush3.bf16.msra.mxu1 %v2047_v50 }
 0x404   :  { %1714 = vmatprep.subr.bf16.mxu1 %v1896_v0 }
 0x4b9   :  { %v618_v42 = vpop.f32.mrb[4].mxu1 }
 0x4ba   :  { %v619_v43 = vadd.f32 %v2092_v59, %v618_v42  ;;  %v1349_v44 = vpop.f32.mrb[5].mxu1 }
 0x4bc   :  { %v622_v47 = vmax.f32 %v619_v43, 0.0 }
 0x4be   :  { %v623_v48 = vadd.f32 %v622_v47, %v236_v45 }
 0x4c0   :  { %1383 = vmatmul.mubr.f32.vlgmr.msra.gmra.mrb[12].mxu0 %v623_v48 }
 0x4c1   :  { %1692 = vmatpush3.bf16.msra.mxu0 %v2020_v9  ;;  %1452 = vmatprep.mubr.msk.f32.mxu0 %vm1897_vm0, %v1898_v1  ;;  %v219_v9 = vadd.f32 %v2103_v11, %v2097_v60  ;;  %v238_v11 = vmax.f32 %v224_v6, 0.0 }
 0x4c2   :  { %1693 = vmatprep.subr.bf16.mxu0 %v1896_v0 }
 0x4c5   :  { %1695 = vmatpush3.bf16.msra.mxu0 %v2023_v15 }
 0x4c6   :  { %1696 = vmatprep.subr.bf16.mxu0 %v1896_v0 }
 0x4c9   :  { %1698 = vmatpush3.bf16.msra.mxu0 %v2027_v21 }
 0x4ca   :  { %1699 = vmatprep.subr.bf16.mxu0 %v1896_v0 }
 0x4cd   :  { %1701 = vmatpush3.bf16.msra.mxu0 %v2031_v28 }
 0x4ce   :  { %1702 = vmatprep.subr.bf16.mxu0 %v1896_v0 }
 0x4d1   :  { %1704 = vmatpush3.bf16.msra.mxu0 %v2035_v34  ;;  %v237_v34 = vmax.f32 %v219_v9, 0.0 }
 0x4d2   :  { %1705 = vmatprep.subr.bf16.mxu0 %v1896_v0 }
 0x4d5   :  { %1707 = vmatpush3.bf16.msra.mxu0 %v2039_v40  ;;  %v840_v40 = vld [vmem:[#allocation10] sm:$0xff] }
 0x4d6   :  { %1708 = vmatprep.subr.bf16.mxu0 %v1896_v0 }
 0x4d9   :  { %1710 = vmatpush3.bf16.msra.mxu0 %v2043_v46  ;;  %v841_v46 = vld [vmem:[#allocation10 + $0x8] sm:$0xff] }
 0x4da   :  { %1711 = vmatprep.subr.bf16.mxu0 %v1896_v0  ;;  %v1715_v53 = vpack.c.bf16 %v841_v46, %v840_v40 }
 0x4dd   :  { %1713 = vmatpush3.bf16.msra.mxu0 %v2047_v50  ;;  %v1718_v50 = vpack.c.bf16 %v843_v54, %v842_v52 }
 0x593   :  { %v690_v15 = vpop.f32.mrb[12].mxu0 }
 0x594   :  { %v691_v21 = vadd.f32 %v2092_v59, %v690_v15  ;;  %v1384_v28 = vpop.f32.mrb[13].mxu0 }
 0x596   :  { %v694_v49 = vmax.f32 %v691_v21, 0.0 }
 0x598   :  { %v695_v51 = vadd.f32 %v694_v49, %v237_v34 }
 0x59a   :  { %1418 = vmatmul.mubr.f32.vlgmr.msra.gmra.mrb[6].mxu1 %v695_v51 }
 0x59b   :  { %1487 = vmatprep.mubr.msk.f32.mxu1 %vm1897_vm0, %v1898_v1  ;;  %1716 = vmatpush3.bf16.msra.mxu1 %v1715_v53  ;;  %v848_v1 = vld [vmem:[#allocation10 + $0x40] sm:$0xff] }
 0x59c   :  { %1717 = vmatprep.subr.bf16.mxu1 %v1896_v0  ;;  %v1727_v2 = vpack.c.bf16 %v849_v63, %v848_v1 }
 0x59f   :  { %1719 = vmatpush3.bf16.msra.mxu1 %v1718_v50 }
 0x5a0   :  { %1720 = vmatprep.subr.bf16.mxu1 %v1896_v0 }
 0x5a3   :  { %1722 = vmatpush3.bf16.msra.mxu1 %v1721_v57 }
 0x5a4   :  { %1723 = vmatprep.subr.bf16.mxu1 %v1896_v0 }
 0x5a7   :  { %1725 = vmatpush3.bf16.msra.mxu1 %v1724_v62 }
 0x5a8   :  { %1726 = vmatprep.subr.bf16.mxu1 %v1896_v0 }
 0x5ab   :  { %1728 = vmatpush3.bf16.msra.mxu1 %v1727_v2 }
 0x5ac   :  { %1729 = vmatprep.subr.bf16.mxu1 %v1896_v0 }
 0x5af   :  { %1731 = vmatpush3.bf16.msra.mxu1 %v1730_v5 }
 0x5b0   :  { %1732 = vmatprep.subr.bf16.mxu1 %v1896_v0 }
 0x5b3   :  { %1734 = vmatpush3.bf16.msra.mxu1 %v1733_v19 }
 0x5b4   :  { %1735 = vmatprep.subr.bf16.mxu1 %v1896_v0 }
 0x5b7   :  { %1737 = vmatpush3.bf16.msra.mxu1 %v1736_v23 }
 0x66d   :  { %v762_v7 = vpop.f32.mrb[6].mxu1 }
 0x66e   :  { %v763_v8 = vadd.f32 %v2092_v59, %v762_v7  ;;  %v1419_v10 = vpop.f32.mrb[7].mxu1 }
 0x670   :  { %v766_v12 = vmax.f32 %v763_v8, 0.0 }
 0x672   :  { %v767_v16 = vadd.f32 %v766_v12, %v238_v11 }
 0x674   :  { %1453 = vmatmul.mubr.f32.vlgmr.msra.gmra.mrb[14].mxu0 %v767_v16 }
 0x747   :  { %v834_v24 = vpop.f32.mrb[14].mxu0 }
 0x748   :  { %v835_v25 = vadd.f32 %v2092_v59, %v834_v24  ;;  %v1454_v26 = vpop.f32.mrb[15].mxu0 }
 0x74a   :  { %v838_v29 = vmax.f32 %v835_v25, 0.0 }
 0x74c   :  { %v839_v30 = vadd.f32 %v838_v29, %v239_v27 }
 0x74e   :  { %1488 = vmatmul.mubr.f32.vlgmr.msra.gmra.mrb[8].mxu1 %v839_v30 }
 0x821   :  { %v929_v0 = vpop.f32.mrb[8].mxu1 }
 0x822   :  { %v930_v32 = vadd.f32 %v953_v31, %v929_v0  ;;  %v1489_v33 = vpop.f32.mrb[9].mxu1 }
 0x824   :  { %933 = vst [vmem:[#allocation11] sm:$0xff] %v930_v32 }
 0x825   :  { %1870 = shalt.err (!%p1867_p2)
}
 0x826   :  { %s1871_s26 = scalar_lea.hbm %s2251_s8, 128 }
 0x827   :  { %p1872_p3 = scmp.ne.s32.totalorder %s2251_s8, %s1871_s26  ;;  %p1875_p4 = scmp.lt.u32.totalorder %s1871_s26, %s2251_s8 }
 0x829   :  { %p1877_p5 = pnand %p1875_p4, %p1872_p3 }
 0x82b   :  { %1880 = shalt.err (!%p1877_p5)
}
 0x82c   :  { %943 = dma.vmem_to_hbm [thread:$0]  %s941_s22, 128, %s2251_s8, [#allocation4]  }
 0x82d   :  { %1887 = dma.done.wait [#allocation4], 128  }
 0x82e   :  { %1888 = vsyncadd [#allocation4], 4294967168 }
 0x82f   :  { %947 = vsyncpa [#allocation3], 1 }
 0x830   :  { %948 = vsyncpa [#allocation6], 1 }
 0x831   :  { %949 = vsyncpa [#allocation9], 1 }
 0x832   :  { %950 = vsyncpa [#allocation4], 1 }

</bundles_post_ra>
